<compile_context>
chip_gen: v5e
topology: v5e:2x2
jax: 0.10.0
libtpu: 0.0.40
codegen_flags: <defaults>
</compile_context>

<pallas_src>
import numpy as np
import jax
import jax.numpy as jnp
from jax.experimental import pallas as pl
from jax.experimental.pallas import tpu as pltpu

N, CIN, H, W = 1, 4, 8, 8
COUT, KH, KW = 5, 2, 2
STRIDE = 2
HW = H * W                              # 64
NTAP = KH * KW                          # 4
OUT_H, OUT_W = H * STRIDE, W * STRIDE   # 16, 16
OUT_HW = OUT_H * OUT_W                  # 256 (lane-dense: 2 * 128)
NEG_SLOPE = 0.02


def convt_leaky_kernel(x_ref, w_ref, b_ref, perm_ref, o_ref, y_scratch):
    # x_ref:    (CIN, HW)          = (4, 64)    input image, channel-major
    # w_ref:    (NTAP, COUT, CIN)  = (4, 5, 4)  weight, tap-major
    # b_ref:    (COUT, 1)                       bias
    # perm_ref: (NTAP*HW, OUT_HW)  = (256, 256) static 0/1 scatter matrix (bf16)
    # o_ref:    (COUT, OUT_HW)     = (5, 256)   flat NCHW output image
    # y_scratch:(COUT, NTAP*HW)    = (5, 256)   stacked per-tap contractions
    x = x_ref[...]

    # Per-tap K=4 channel contraction on the VPU (pairwise tree, 4 FMAs each;
    # the MXU would be <1% utilized at (5,4)x(4,64)).  Static unroll, static
    # column-offset stores into the scratch.
    for k in range(NTAP):
        wk = w_ref[k]                                        # (5, 4)
        t0 = wk[:, 0:1] * x[0:1, :] + wk[:, 1:2] * x[1:2, :]
        t1 = wk[:, 2:3] * x[2:3, :] + wk[:, 3:4] * x[3:4, :]
        y_scratch[:, k * HW:(k + 1) * HW] = t0 + t1          # (5, 64)

    # Single MXU dot does scatter + cross-tap accumulation in one pass.
    # perm has exactly one 1.0 per output column -> numerically exact even
    # through the f32 multi-pass decomposition; 0/1 are exact in bf16.
    y = jnp.dot(y_scratch[...], perm_ref[...].astype(jnp.float32),
                preferred_element_type=jnp.float32)          # (5, 256)

    y = y + b_ref[...]                                       # (5,1) lane-broadcast
    # torch.where(y1 > 0, y1, y1 * 0.02)
    o_ref[...] = jnp.where(y > 0, y, y * NEG_SLOPE)


def _build_perm():
    """Static 0/1 scatter matrix mapping (tap k, input pixel m) -> output pixel."""
    perm = np.zeros((NTAP * HW, OUT_HW), dtype=np.float32)
    for k in range(NTAP):
        kh, kw = k // KW, k % KW
        for m in range(HW):
            h, w = m // W, m % W
            p = (h * STRIDE + kh) * OUT_W + (w * STRIDE + kw)
            perm[k * HW + m, p] = 1.0
    return jnp.asarray(perm, dtype=jnp.bfloat16)             # 0/1 exact in bf16


def init_params(weight, bias):
    """One-time parameter prep (hoisted off the per-call forward path).

    weight: (CIN, COUT, KH, KW) as in torch ConvTranspose2d; bias: (COUT,)."""
    w3 = (weight.astype(jnp.float32)
          .transpose(2, 3, 1, 0)                             # (KH,KW,COUT,CIN)
          .reshape(NTAP, COUT, CIN))
    b2 = bias.astype(jnp.float32).reshape(COUT, 1)
    perm = _build_perm()
    return w3, b2, perm


@jax.jit
def model_forward(x, w3, b2, perm):
    """x: any array with 256 elements (reshaped to (1,4,8,8) like the module)."""
    xm = x.reshape(CIN, HW).astype(jnp.float32)              # free reshape

    out = pl.pallas_call(
        convt_leaky_kernel,
        out_shape=jax.ShapeDtypeStruct((COUT, OUT_HW), jnp.float32),
        in_specs=[
            pl.BlockSpec(memory_space=pltpu.MemorySpace.VMEM),
            pl.BlockSpec(memory_space=pltpu.MemorySpace.VMEM),
            pl.BlockSpec(memory_space=pltpu.MemorySpace.VMEM),
            pl.BlockSpec(memory_space=pltpu.MemorySpace.VMEM),
        ],
        out_specs=pl.BlockSpec(memory_space=pltpu.MemorySpace.VMEM),
        scratch_shapes=[pltpu.VMEM((COUT, NTAP * HW), jnp.float32)],
    )(xm, w3, b2, perm)

    # (5, 256) is already in NCHW linear order -> free reshape.
    return out.reshape(N, COUT, OUT_H, OUT_W)


def reference_forward(x, weight, bias):
    """Pure-JAX reference (independent formulation) for a sanity check."""
    x = x.reshape(N, CIN, H, W).astype(jnp.float32)
    w = weight.astype(jnp.float32)
    # stride == kernel == 2, no padding: each input pixel emits a 2x2 patch.
    y = jnp.einsum('nchw,cokl->nohkwl', x, w)
    y = y.reshape(N, COUT, OUT_H, OUT_W) + bias.astype(jnp.float32).reshape(1, COUT, 1, 1)
    return jnp.where(y > 0, y, y * NEG_SLOPE)


if __name__ == "__main__":
    key = jax.random.PRNGKey(0)
    kx, kwt, kb = jax.random.split(key, 3)

    # Deterministic synthetic parameters mimicking ConvTranspose2d init shapes.
    fan_in = CIN * KH * KW
    bound = 1.0 / (fan_in ** 0.5)
    weight = jax.random.uniform(kwt, (CIN, COUT, KH, KW),
                                minval=-bound, maxval=bound, dtype=jnp.float32)
    bias = jax.random.uniform(kb, (COUT,),
                              minval=-bound, maxval=bound, dtype=jnp.float32)

    # Input: 256 elements, consistent with x.reshape(1, 4, 8, 8) in the module.
    x = jax.random.normal(kx, (1, CIN, H, W), dtype=jnp.float32)

    # One-time prep (not on the per-call path).
    w3, b2, perm = init_params(weight, bias)

    out = jax.block_until_ready(model_forward(x, w3, b2, perm))

    ref = reference_forward(x, weight, bias)
    assert out.shape == (1, COUT, OUT_H, OUT_W), out.shape
    assert jnp.allclose(out, ref, atol=1e-5, rtol=1e-5)

    print("KERNEL_OK")
</pallas_src>

<mosaic_0001>
module attributes {stable_mosaic.version = 11 : i64} {
  func.func @convt_leaky_kernel(%arg0: memref<4x64xf32, #tpu.memory_space<vmem>>, %arg1: memref<4x5x4xf32, #tpu.memory_space<vmem>>, %arg2: memref<5x1xf32, #tpu.memory_space<vmem>>, %arg3: memref<256x256xbf16, #tpu.memory_space<vmem>>, %arg4: memref<5x256xf32, #tpu.memory_space<vmem>>, %arg5: memref<5x256xf32, #tpu.memory_space<vmem>>) attributes {dimension_semantics = [], scalar_prefetch = 0 : i64, scratch_operands = 1 : i64, tpu.core_type = #tpu.core_type<tc>} {
    %c0 = arith.constant 0 : index
    %c0_0 = arith.constant 0 : index
    %0 = vector.load %arg0[%c0, %c0_0] : memref<4x64xf32, #tpu.memory_space<vmem>>, vector<4x64xf32>
    %c0_1 = arith.constant 0 : index
    %c0_2 = arith.constant 0 : index
    %c0_3 = arith.constant 0 : index
    %1 = vector.load %arg1[%c0_1, %c0_2, %c0_3] : memref<4x5x4xf32, #tpu.memory_space<vmem>>, vector<1x5x4xf32>
    %2 = vector.shape_cast %1 : vector<1x5x4xf32> to vector<5x4xf32>
    %3 = vector.extract_strided_slice %2 {offsets = [0, 0], sizes = [5, 1], strides = [1, 1]} : vector<5x4xf32> to vector<5x1xf32>
    %4 = vector.extract_strided_slice %0 {offsets = [0, 0], sizes = [1, 64], strides = [1, 1]} : vector<4x64xf32> to vector<1x64xf32>
    %5 = vector.broadcast %3 : vector<5x1xf32> to vector<5x64xf32>
    %6 = vector.broadcast %4 : vector<1x64xf32> to vector<5x64xf32>
    %7 = arith.mulf %5, %6 : vector<5x64xf32>
    %8 = vector.extract_strided_slice %2 {offsets = [0, 1], sizes = [5, 1], strides = [1, 1]} : vector<5x4xf32> to vector<5x1xf32>
    %9 = vector.extract_strided_slice %0 {offsets = [1, 0], sizes = [1, 64], strides = [1, 1]} : vector<4x64xf32> to vector<1x64xf32>
    %10 = vector.broadcast %8 : vector<5x1xf32> to vector<5x64xf32>
    %11 = vector.broadcast %9 : vector<1x64xf32> to vector<5x64xf32>
    %12 = arith.mulf %10, %11 : vector<5x64xf32>
    %13 = arith.addf %7, %12 : vector<5x64xf32>
    %14 = vector.extract_strided_slice %2 {offsets = [0, 2], sizes = [5, 1], strides = [1, 1]} : vector<5x4xf32> to vector<5x1xf32>
    %15 = vector.extract_strided_slice %0 {offsets = [2, 0], sizes = [1, 64], strides = [1, 1]} : vector<4x64xf32> to vector<1x64xf32>
    %16 = vector.broadcast %14 : vector<5x1xf32> to vector<5x64xf32>
    %17 = vector.broadcast %15 : vector<1x64xf32> to vector<5x64xf32>
    %18 = arith.mulf %16, %17 : vector<5x64xf32>
    %19 = vector.extract_strided_slice %2 {offsets = [0, 3], sizes = [5, 1], strides = [1, 1]} : vector<5x4xf32> to vector<5x1xf32>
    %20 = vector.extract_strided_slice %0 {offsets = [3, 0], sizes = [1, 64], strides = [1, 1]} : vector<4x64xf32> to vector<1x64xf32>
    %21 = vector.broadcast %19 : vector<5x1xf32> to vector<5x64xf32>
    %22 = vector.broadcast %20 : vector<1x64xf32> to vector<5x64xf32>
    %23 = arith.mulf %21, %22 : vector<5x64xf32>
    %24 = arith.addf %18, %23 : vector<5x64xf32>
    %25 = arith.addf %13, %24 : vector<5x64xf32>
    %c0_4 = arith.constant 0 : index
    %c0_5 = arith.constant 0 : index
    %26 = vector.load %arg5[%c0_4, %c0_5] : memref<5x256xf32, #tpu.memory_space<vmem>>, vector<5x64xf32>
    tpu.vector_store %arg5[%c0_4, %c0_5], %25 {strides = array<i32>} : memref<5x256xf32, #tpu.memory_space<vmem>>, vector<5x64xf32>,
    %c1 = arith.constant 1 : index
    %c0_6 = arith.constant 0 : index
    %c0_7 = arith.constant 0 : index
    %27 = vector.load %arg1[%c1, %c0_6, %c0_7] : memref<4x5x4xf32, #tpu.memory_space<vmem>>, vector<1x5x4xf32>
    %28 = vector.shape_cast %27 : vector<1x5x4xf32> to vector<5x4xf32>
    %29 = vector.extract_strided_slice %28 {offsets = [0, 0], sizes = [5, 1], strides = [1, 1]} : vector<5x4xf32> to vector<5x1xf32>
    %30 = vector.extract_strided_slice %0 {offsets = [0, 0], sizes = [1, 64], strides = [1, 1]} : vector<4x64xf32> to vector<1x64xf32>
    %31 = vector.broadcast %29 : vector<5x1xf32> to vector<5x64xf32>
    %32 = vector.broadcast %30 : vector<1x64xf32> to vector<5x64xf32>
    %33 = arith.mulf %31, %32 : vector<5x64xf32>
    %34 = vector.extract_strided_slice %28 {offsets = [0, 1], sizes = [5, 1], strides = [1, 1]} : vector<5x4xf32> to vector<5x1xf32>
    %35 = vector.extract_strided_slice %0 {offsets = [1, 0], sizes = [1, 64], strides = [1, 1]} : vector<4x64xf32> to vector<1x64xf32>
    %36 = vector.broadcast %34 : vector<5x1xf32> to vector<5x64xf32>
    %37 = vector.broadcast %35 : vector<1x64xf32> to vector<5x64xf32>
    %38 = arith.mulf %36, %37 : vector<5x64xf32>
    %39 = arith.addf %33, %38 : vector<5x64xf32>
    %40 = vector.extract_strided_slice %28 {offsets = [0, 2], sizes = [5, 1], strides = [1, 1]} : vector<5x4xf32> to vector<5x1xf32>
    %41 = vector.extract_strided_slice %0 {offsets = [2, 0], sizes = [1, 64], strides = [1, 1]} : vector<4x64xf32> to vector<1x64xf32>
    %42 = vector.broadcast %40 : vector<5x1xf32> to vector<5x64xf32>
    %43 = vector.broadcast %41 : vector<1x64xf32> to vector<5x64xf32>
    %44 = arith.mulf %42, %43 : vector<5x64xf32>
    %45 = vector.extract_strided_slice %28 {offsets = [0, 3], sizes = [5, 1], strides = [1, 1]} : vector<5x4xf32> to vector<5x1xf32>
    %46 = vector.extract_strided_slice %0 {offsets = [3, 0], sizes = [1, 64], strides = [1, 1]} : vector<4x64xf32> to vector<1x64xf32>
    %47 = vector.broadcast %45 : vector<5x1xf32> to vector<5x64xf32>
    %48 = vector.broadcast %46 : vector<1x64xf32> to vector<5x64xf32>
    %49 = arith.mulf %47, %48 : vector<5x64xf32>
    %50 = arith.addf %44, %49 : vector<5x64xf32>
    %51 = arith.addf %39, %50 : vector<5x64xf32>
    %c0_8 = arith.constant 0 : index
    %c64 = arith.constant 64 : index
    %52 = vector.load %arg5[%c0_8, %c64] : memref<5x256xf32, #tpu.memory_space<vmem>>, vector<5x64xf32>
    tpu.vector_store %arg5[%c0_8, %c64], %51 {strides = array<i32>} : memref<5x256xf32, #tpu.memory_space<vmem>>, vector<5x64xf32>,
    %c2 = arith.constant 2 : index
    %c0_9 = arith.constant 0 : index
    %c0_10 = arith.constant 0 : index
    %53 = vector.load %arg1[%c2, %c0_9, %c0_10] : memref<4x5x4xf32, #tpu.memory_space<vmem>>, vector<1x5x4xf32>
    %54 = vector.shape_cast %53 : vector<1x5x4xf32> to vector<5x4xf32>
    %55 = vector.extract_strided_slice %54 {offsets = [0, 0], sizes = [5, 1], strides = [1, 1]} : vector<5x4xf32> to vector<5x1xf32>
    %56 = vector.extract_strided_slice %0 {offsets = [0, 0], sizes = [1, 64], strides = [1, 1]} : vector<4x64xf32> to vector<1x64xf32>
    %57 = vector.broadcast %55 : vector<5x1xf32> to vector<5x64xf32>
    %58 = vector.broadcast %56 : vector<1x64xf32> to vector<5x64xf32>
    %59 = arith.mulf %57, %58 : vector<5x64xf32>
    %60 = vector.extract_strided_slice %54 {offsets = [0, 1], sizes = [5, 1], strides = [1, 1]} : vector<5x4xf32> to vector<5x1xf32>
    %61 = vector.extract_strided_slice %0 {offsets = [1, 0], sizes = [1, 64], strides = [1, 1]} : vector<4x64xf32> to vector<1x64xf32>
    %62 = vector.broadcast %60 : vector<5x1xf32> to vector<5x64xf32>
    %63 = vector.broadcast %61 : vector<1x64xf32> to vector<5x64xf32>
    %64 = arith.mulf %62, %63 : vector<5x64xf32>
    %65 = arith.addf %59, %64 : vector<5x64xf32>
    %66 = vector.extract_strided_slice %54 {offsets = [0, 2], sizes = [5, 1], strides = [1, 1]} : vector<5x4xf32> to vector<5x1xf32>
    %67 = vector.extract_strided_slice %0 {offsets = [2, 0], sizes = [1, 64], strides = [1, 1]} : vector<4x64xf32> to vector<1x64xf32>
    %68 = vector.broadcast %66 : vector<5x1xf32> to vector<5x64xf32>
    %69 = vector.broadcast %67 : vector<1x64xf32> to vector<5x64xf32>
    %70 = arith.mulf %68, %69 : vector<5x64xf32>
    %71 = vector.extract_strided_slice %54 {offsets = [0, 3], sizes = [5, 1], strides = [1, 1]} : vector<5x4xf32> to vector<5x1xf32>
    %72 = vector.extract_strided_slice %0 {offsets = [3, 0], sizes = [1, 64], strides = [1, 1]} : vector<4x64xf32> to vector<1x64xf32>
    %73 = vector.broadcast %71 : vector<5x1xf32> to vector<5x64xf32>
    %74 = vector.broadcast %72 : vector<1x64xf32> to vector<5x64xf32>
    %75 = arith.mulf %73, %74 : vector<5x64xf32>
    %76 = arith.addf %70, %75 : vector<5x64xf32>
    %77 = arith.addf %65, %76 : vector<5x64xf32>
    %c0_11 = arith.constant 0 : index
    %c128 = arith.constant 128 : index
    %78 = vector.load %arg5[%c0_11, %c128] : memref<5x256xf32, #tpu.memory_space<vmem>>, vector<5x64xf32>
    tpu.vector_store %arg5[%c0_11, %c128], %77 {strides = array<i32>} : memref<5x256xf32, #tpu.memory_space<vmem>>, vector<5x64xf32>,
    %c3 = arith.constant 3 : index
    %c0_12 = arith.constant 0 : index
    %c0_13 = arith.constant 0 : index
    %79 = vector.load %arg1[%c3, %c0_12, %c0_13] : memref<4x5x4xf32, #tpu.memory_space<vmem>>, vector<1x5x4xf32>
    %80 = vector.shape_cast %79 : vector<1x5x4xf32> to vector<5x4xf32>
    %81 = vector.extract_strided_slice %80 {offsets = [0, 0], sizes = [5, 1], strides = [1, 1]} : vector<5x4xf32> to vector<5x1xf32>
    %82 = vector.extract_strided_slice %0 {offsets = [0, 0], sizes = [1, 64], strides = [1, 1]} : vector<4x64xf32> to vector<1x64xf32>
    %83 = vector.broadcast %81 : vector<5x1xf32> to vector<5x64xf32>
    %84 = vector.broadcast %82 : vector<1x64xf32> to vector<5x64xf32>
    %85 = arith.mulf %83, %84 : vector<5x64xf32>
    %86 = vector.extract_strided_slice %80 {offsets = [0, 1], sizes = [5, 1], strides = [1, 1]} : vector<5x4xf32> to vector<5x1xf32>
    %87 = vector.extract_strided_slice %0 {offsets = [1, 0], sizes = [1, 64], strides = [1, 1]} : vector<4x64xf32> to vector<1x64xf32>
    %88 = vector.broadcast %86 : vector<5x1xf32> to vector<5x64xf32>
    %89 = vector.broadcast %87 : vector<1x64xf32> to vector<5x64xf32>
    %90 = arith.mulf %88, %89 : vector<5x64xf32>
    %91 = arith.addf %85, %90 : vector<5x64xf32>
    %92 = vector.extract_strided_slice %80 {offsets = [0, 2], sizes = [5, 1], strides = [1, 1]} : vector<5x4xf32> to vector<5x1xf32>
    %93 = vector.extract_strided_slice %0 {offsets = [2, 0], sizes = [1, 64], strides = [1, 1]} : vector<4x64xf32> to vector<1x64xf32>
    %94 = vector.broadcast %92 : vector<5x1xf32> to vector<5x64xf32>
    %95 = vector.broadcast %93 : vector<1x64xf32> to vector<5x64xf32>
    %96 = arith.mulf %94, %95 : vector<5x64xf32>
    %97 = vector.extract_strided_slice %80 {offsets = [0, 3], sizes = [5, 1], strides = [1, 1]} : vector<5x4xf32> to vector<5x1xf32>
    %98 = vector.extract_strided_slice %0 {offsets = [3, 0], sizes = [1, 64], strides = [1, 1]} : vector<4x64xf32> to vector<1x64xf32>
    %99 = vector.broadcast %97 : vector<5x1xf32> to vector<5x64xf32>
    %100 = vector.broadcast %98 : vector<1x64xf32> to vector<5x64xf32>
    %101 = arith.mulf %99, %100 : vector<5x64xf32>
    %102 = arith.addf %96, %101 : vector<5x64xf32>
    %103 = arith.addf %91, %102 : vector<5x64xf32>
    %c0_14 = arith.constant 0 : index
    %c192 = arith.constant 192 : index
    %104 = vector.load %arg5[%c0_14, %c192] : memref<5x256xf32, #tpu.memory_space<vmem>>, vector<5x64xf32>
    tpu.vector_store %arg5[%c0_14, %c192], %103 {strides = array<i32>} : memref<5x256xf32, #tpu.memory_space<vmem>>, vector<5x64xf32>,
    %c0_15 = arith.constant 0 : index
    %c0_16 = arith.constant 0 : index
    %105 = vector.load %arg5[%c0_15, %c0_16] : memref<5x256xf32, #tpu.memory_space<vmem>>, vector<5x256xf32>
    %c0_17 = arith.constant 0 : index
    %c0_18 = arith.constant 0 : index
    %106 = vector.load %arg3[%c0_17, %c0_18] : memref<256x256xbf16, #tpu.memory_space<vmem>>, vector<256x256xbf16>
    %107 = arith.extf %106 : vector<256x256xbf16> to vector<256x256xf32>
    %cst = arith.constant dense<0.000000e+00> : vector<5x256xf32>
    %108 = tpu.matmul %105, %107, %cst {dimension_numbers = #tpu.dot_dimension_numbers<[1], [0], [0], [1], [0, 0, 1, 1], [], []>} : vector<5x256xf32>, vector<256x256xf32>, vector<5x256xf32> -> vector<5x256xf32>
    %c0_19 = arith.constant 0 : index
    %c0_20 = arith.constant 0 : index
    %109 = vector.load %arg2[%c0_19, %c0_20] : memref<5x1xf32, #tpu.memory_space<vmem>>, vector<5x1xf32>
    %110 = vector.broadcast %109 : vector<5x1xf32> to vector<5x256xf32>
    %111 = arith.addf %108, %110 : vector<5x256xf32>
    %cst_21 = arith.constant 0.000000e+00 : f32
    %112 = vector.broadcast %cst_21 : f32 to vector<5x256xf32>
    %113 = arith.cmpf ogt, %111, %112 : vector<5x256xf32>
    %cst_22 = arith.constant 2.000000e-02 : f32
    %114 = vector.broadcast %cst_22 : f32 to vector<5x256xf32>
    %115 = arith.mulf %111, %114 : vector<5x256xf32>
    %116 = arith.select %113, %111, %115 : vector<5x256xi1>, vector<5x256xf32>
    %c0_23 = arith.constant 0 : index
    %c0_24 = arith.constant 0 : index
    %117 = vector.load %arg4[%c0_23, %c0_24] : memref<5x256xf32, #tpu.memory_space<vmem>>, vector<5x256xf32>
    tpu.vector_store %arg4[%c0_23, %c0_24], %116 {strides = array<i32>} : memref<5x256xf32, #tpu.memory_space<vmem>>, vector<5x256xf32>,
    return
  }
}

</mosaic_0001>

<bundles_post_ra>
// kernel: model_forward.1
= control target key start
LH: loop header
LB: loop body
LE: loop exit
PB: predicated region body
PF: predicated region fallthrough
CT: control target
= control target key end

     0   :  { %9 = vsyncpa [#allocation4], 0  ;;  %s406_s18 = smov [#allocation3]   ;;  %s407_s20 = smov 128   ;;  %s492_s0 = inlined_call_operand.vmem [shape: f32[4,64], index: 0, kind: input, shape index: {}]   ;;  %s493_s1 = inlined_call_operand.vmem [shape: f32[4,5,4], index: 1, kind: input, shape index: {}]   ;;  %s494_s2 = inlined_call_operand.vmem [shape: f32[5,1], index: 2, kind: input, shape index: {}]   ;;  %s495_s3 = inlined_call_operand.hbm [shape: bf16[256,256], index: 3, kind: input, shape index: {}]   ;;  %s496_s4 = inlined_call_operand.vmem [shape: f32[5,256], index: 4, kind: output, shape index: {}]  }
   0x1   :  { %s20_s17 = sshll.u32 %s495_s3, 4  ;;  %s22_s19 = sshll.u32 %s406_s18, 4  ;;  %s21_s17 = int_to_ptr.hbm [resolvable:$true] %s20_s17  ;;  %s23_s19 = int_to_ptr.vmem [resolvable:$true] %s22_s19 }
   0x2   :  { %s408_s21 = smov 8  }
   0x3   :  { %28 = dma.hbm_to_vmem [thread:$0]  %s21_s17, 4096, %s23_s19, [#allocation4], %s407_s20, %s407_s20, %s408_s21  }
   0x4   :  { %404 = dma.done.wait [#allocation4], 4096  }
   0x5   :  { %405 = vsyncadd [#allocation4], 4294963200  ;;  %v409_v0 = vmov 2   ;;  %v410_v1 = vmov 0   ;;  %v352_v2 = vld [vmem:[%s493_s1 + $0x8] sm:$0x1f] }
   0x6   :  { %365 = vset.pattern.permute.xlu1 %v409_v0  ;;  %363 = vset.pattern.permute.xlu0 %v410_v1  ;;  %v354_v3 = vld [vmem:[%s493_s1 + $0x18] sm:$0x1f]  ;;  %v411_v4 = vmov 3   ;;  %v412_v5 = vmov 1   ;;  %v34_v6 = vld [vmem:[%s493_s1] sm:$0x1f] }
   0x7   :  { %367 = vset.pattern.permute.xlu2 %v410_v1  ;;  %80 = vperm.xlu1 %365, %v352_v2   ;;  %v353_v7 = vld [vmem:[%s493_s1 + $0x10] sm:$0x1f]  ;;  %v188_v9 = vld [vmem:[#allocation3 + $0xf8] sm:$0xff]  ;;  %v187_v10 = vld [vmem:[#allocation3 + $0xf0] sm:$0xff]  ;;  %vm63_vm0 = vcmask 520192   ;;  %vm95_vm1 = vcmask 1044992  }
   0x8   :  { %69 = vperm.xlu0 %363, %v352_v2   ;;  %128 = vperm.xlu2 %367, %v354_v3   ;;  %v186_v11 = vld [vmem:[#allocation3 + $0xe8] sm:$0xff]  ;;  %v251_v12 = vunpack.c.l.bf16 %v188_v9  ;;  %v252_v13 = vunpack.c.h.bf16 %v188_v9  ;;  %v249_v14 = vunpack.c.l.bf16 %v187_v10  ;;  %v250_v15 = vunpack.c.h.bf16 %v187_v10  ;;  %v185_v16 = vld [vmem:[#allocation3 + $0xe0] sm:$0xff]  ;;  %v33_v23 = vld [vmem:[%s492_s0] sm:$0xf]  ;;  %s413_s0 = smov 64  }
   0x9   :  { %v247_v17 = vunpack.c.l.bf16 %v186_v11  ;;  %v248_v18 = vunpack.c.h.bf16 %v186_v11  ;;  %v245_v21 = vunpack.c.l.bf16 %v185_v16  ;;  %v246_v22 = vunpack.c.h.bf16 %v185_v16  ;;  %v184_v33 = vld [vmem:[#allocation3 + $0xd8] sm:$0xff]  ;;  %v183_v34 = vld [vmem:[#allocation3 + $0xd0] sm:$0xff]  ;;  %v182_v35 = vld [vmem:[#allocation3 + $0xc8] sm:$0xff] }
   0xa   :  { %279 = vmatpush.msra.mxu1 %v251_v12  ;;  %319 = vmatpush.msra.mxu3 %v252_v13  ;;  %v457_v25 = vperm.slane %v33_v23, 2  ;;  %v459_v26 = vperm.slane %v33_v23, 0  ;;  %v461_v27 = vperm.slane %v33_v23, 3  ;;  %v463_v28 = vperm.slane %v33_v23, 1  ;;  %v172_v40 = vld [vmem:[#allocation3 + $0x78] sm:$0xff]  ;;  %v181_v43 = vld [vmem:[#allocation3 + $0xc0] sm:$0xff] }
   0xb   :  { %v243_v38 = vunpack.c.l.bf16 %v184_v33  ;;  %v244_v39 = vunpack.c.h.bf16 %v184_v33  ;;  %v241_v41 = vunpack.c.l.bf16 %v183_v34  ;;  %v242_v42 = vunpack.c.h.bf16 %v183_v34  ;;  %v180_v58 = vld [vmem:[#allocation3 + $0xb8] sm:$0xff]  ;;  %v171_v59 = vld [vmem:[#allocation3 + $0x70] sm:$0xff] }
   0xc   :  { %280 = vmatpush.msra.mxu1 %v249_v14  ;;  %320 = vmatpush.msra.mxu3 %v250_v15  ;;  %v239_v46 = vunpack.c.l.bf16 %v182_v35  ;;  %v240_v48 = vunpack.c.h.bf16 %v182_v35  ;;  %v219_v49 = vunpack.c.l.bf16 %v172_v40  ;;  %v220_v50 = vunpack.c.h.bf16 %v172_v40  ;;  %v179_v60 = vld [vmem:[#allocation3 + $0xb0] sm:$0xff] }
   0xd   :  { %v237_v52 = vunpack.c.l.bf16 %v181_v43  ;;  %v238_v55 = vunpack.c.h.bf16 %v181_v43  ;;  %v235_v63 = vunpack.c.l.bf16 %v180_v58 }
   0xe   :  { %281 = vmatpush.msra.mxu1 %v247_v17  ;;  %321 = vmatpush.msra.mxu3 %v248_v18 }
   0xf   :  { %366 = vset.pattern.permute.xlu1 %v411_v4  ;;  %259 = vmatpush.msra.mxu0 %v219_v49 }
  0x10   :  { %364 = vset.pattern.permute.xlu0 %v412_v5  ;;  %85 = vperm.xlu1 %366, %v352_v2  }
  0x11   :  { %74 = vperm.xlu0 %364, %v352_v2   ;;  %368 = vset.pattern.permute.xlu2 %v412_v5  ;;  %v178_v2 = vld [vmem:[#allocation3 + $0xa8] sm:$0xff] }
  0x12   :  { %133 = vperm.xlu2 %368, %v354_v3   ;;  %282 = vmatpush.msra.mxu1 %v245_v21  ;;  %v231_v13 = vunpack.c.l.bf16 %v178_v2  ;;  %v232_v14 = vunpack.c.h.bf16 %v178_v2 }
  0x13   :  { %322 = vmatpush.msra.mxu3 %v246_v22  ;;  %299 = vmatpush.msra.mxu2 %v220_v50 }
  0x14   :  { %283 = vmatpush.msra.mxu1 %v243_v38 }
  0x15   :  { %323 = vmatpush.msra.mxu3 %v244_v39 }
  0x16   :  { %284 = vmatpush.msra.mxu1 %v241_v41 }
  0x17   :  { %324 = vmatpush.msra.mxu3 %v242_v42 }
  0x18   :  { %369 = vset.pattern.permute.xlu1 %v409_v0  ;;  %285 = vmatpush.msra.mxu1 %v239_v46 }
  0x19   :  { %371 = vset.pattern.permute.xlu0 %v410_v1  ;;  %139 = vperm.xlu1 %369, %v354_v3  }
  0x1a   :  { %37 = vperm.xlu0 %371, %v34_v6   ;;  %370 = vset.pattern.permute.xlu2 %v411_v4 }
  0x1b   :  { %144 = vperm.xlu2 %370, %v354_v3   ;;  %325 = vmatpush.msra.mxu3 %v240_v48  ;;  %v169_v3 = vld [vmem:[#allocation3 + $0x60] sm:$0xff]  ;;  %v176_v48 = vld [vmem:[#allocation3 + $0x98] sm:$0xff] }
  0x1c   :  { %286 = vmatpush.msra.mxu1 %v237_v52  ;;  %v213_v15 = vunpack.c.l.bf16 %v169_v3  ;;  %v214_v17 = vunpack.c.h.bf16 %v169_v3  ;;  %v227_v49 = vunpack.c.l.bf16 %v176_v48  ;;  %v228_v50 = vunpack.c.h.bf16 %v176_v48  ;;  %v175_v52 = vld [vmem:[#allocation3 + $0x90] sm:$0xff] }
  0x1d   :  { %326 = vmatpush.msra.mxu3 %v238_v55 }
  0x1e   :  { %287 = vmatpush.msra.mxu1 %v235_v63 }
  0x21   :  { %372 = vset.pattern.permute.xlu1 %v412_v5 }
  0x22   :  { %376 = vset.pattern.permute.xlu0 %v412_v5  ;;  %43 = vperm.xlu1 %372, %v34_v6   ;;  %v218_v5 = vunpack.c.h.bf16 %v171_v59 }
  0x23   :  { %106 = vperm.xlu0 %376, %v353_v7   ;;  %373 = vset.pattern.permute.xlu2 %v409_v0 }
  0x24   :  { %50 = vperm.xlu2 %373, %v34_v6   ;;  %300 = vmatpush.msra.mxu2 %v218_v5 }
  0x2a   :  { %374 = vset.pattern.permute.xlu1 %v411_v4 }
  0x2b   :  { %379 = vset.pattern.permute.xlu0 %v410_v1  ;;  %56 = vperm.xlu1 %374, %v34_v6   ;;  %v233_v6 = vunpack.c.l.bf16 %v179_v60 }
  0x2c   :  { %375 = vset.pattern.permute.xlu2 %v410_v1  ;;  %v170_v1 = vld [vmem:[#allocation3 + $0x68] sm:$0xff] }
  0x2d   :  { %101 = vperm.xlu2 %375, %v353_v7   ;;  %v215_v11 = vunpack.c.l.bf16 %v170_v1  ;;  %v216_v12 = vunpack.c.h.bf16 %v170_v1  ;;  %288 = vmatpush.msra.mxu1 %v233_v6 }
  0x2f   :  { %301 = vmatpush.msra.mxu2 %v216_v12  ;;  %289 = vmatpush.msra.mxu1 %v231_v13  ;;  %v160_v13 = vld [vmem:[#allocation3 + $0x18] sm:$0xff] }
  0x31   :  { %302 = vmatpush.msra.mxu2 %v214_v17  ;;  %v158_v17 = vld [vmem:[#allocation3 + $0x8] sm:$0xff] }
  0x33   :  { %377 = vset.pattern.permute.xlu1 %v409_v0  ;;  %v236_v0 = vunpack.c.h.bf16 %v180_v58  ;;  %v173_v58 = vld [vmem:[#allocation3 + $0x80] sm:$0xff] }
  0x34   :  { %112 = vperm.xlu1 %377, %v353_v7   ;;  %v222_v1 = vunpack.c.h.bf16 %v173_v58 }
  0x35   :  { %378 = vset.pattern.permute.xlu2 %v411_v4  ;;  %v217_v4 = vunpack.c.l.bf16 %v171_v59  ;;  %327 = vmatpush.msra.mxu3 %v236_v0  ;;  %v164_v59 = vld [vmem:[#allocation3 + $0x38] sm:$0xff]  ;;  %v221_v0 = vunpack.c.l.bf16 %v173_v58 }
  0x36   :  { %117 = vperm.xlu2 %378, %v353_v7   ;;  %v234_v7 = vunpack.c.h.bf16 %v179_v60  ;;  %v203_v2 = vunpack.c.l.bf16 %v164_v59  ;;  %v204_v3 = vunpack.c.h.bf16 %v164_v59 }
  0x37   :  { %260 = vmatpush.msra.mxu0 %v217_v4  ;;  %v163_v4 = vld [vmem:[#allocation3 + $0x30] sm:$0xff] }
  0x38   :  { %328 = vmatpush.msra.mxu3 %v234_v7  ;;  %v201_v5 = vunpack.c.l.bf16 %v163_v4  ;;  %v202_v6 = vunpack.c.h.bf16 %v163_v4  ;;  %v162_v7 = vld [vmem:[#allocation3 + $0x28] sm:$0xff] }
  0x39   :  { %261 = vmatpush.msra.mxu0 %v215_v11 }
  0x3a   :  { %329 = vmatpush.msra.mxu3 %v232_v14  ;;  %v195_v14 = vunpack.c.l.bf16 %v160_v13 }
  0x3b   :  { %262 = vmatpush.msra.mxu0 %v213_v15  ;;  %v196_v15 = vunpack.c.h.bf16 %v160_v13 }
  0x62   :  { %v129_v8 = vpop.permute.xlu2 %128 }
  0x63   :  { %v131_v53 = vmul.f32 %v129_v8, %v459_v26  ;;  %v177_v8 = vld [vmem:[#allocation3 + $0xa0] sm:$0xff] }
  0x64   :  { %v229_v18 = vunpack.c.l.bf16 %v177_v8 }
  0x66   :  { %290 = vmatpush.msra.mxu1 %v229_v18  ;;  %v157_v18 = vld [vmem:[#allocation3] sm:$0xff] }
  0x68   :  { %291 = vmatpush.msra.mxu1 %v227_v49 }
  0x6c   :  { %v134_v24 = vpop.permute.xlu2 %133 }
  0x6d   :  { %v136_v54 = vmul.f32 %v134_v24, %v463_v28 }
  0x6f   :  { %v137_v61 = vadd.f32 %v136_v54, %v131_v53  ;;  %v174_v53 = vld [vmem:[#allocation3 + $0x88] sm:$0xff]  ;;  %v226_v54 = vunpack.c.h.bf16 %v175_v52 }
  0x70   :  { %v223_v60 = vunpack.c.l.bf16 %v174_v53 }
  0x75   :  { %v145_v47 = vpop.permute.xlu2 %144 }
  0x76   :  { %v147_v56 = vmul.f32 %v145_v47, %v461_v27 }
  0x79   :  { %v81_v19 = vpop.permute.xlu1 %80 }
  0x7a   :  { %v70_v20 = vpop.permute.xlu0 %69  ;;  %v83_v29 = vmul.f32 %v81_v19, %v457_v25  ;;  %v230_v19 = vunpack.c.h.bf16 %v177_v8  ;;  %v161_v8 = vld [vmem:[#allocation3 + $0x20] sm:$0xff] }
  0x7b   :  { %v72_v30 = vmul.f32 %v70_v20, %v459_v26  ;;  %v197_v11 = vunpack.c.l.bf16 %v161_v8  ;;  %v198_v12 = vunpack.c.h.bf16 %v161_v8 }
  0x7c   :  { %330 = vmatpush.msra.mxu3 %v230_v19 }
  0x7e   :  { %v51_v10 = vpop.permute.xlu2 %50  ;;  %331 = vmatpush.msra.mxu3 %v228_v50 }
  0x80   :  { %332 = vmatpush.msra.mxu3 %v226_v54 }
  0x82   :  { %v86_v31 = vpop.permute.xlu1 %85 }
  0x83   :  { %v75_v32 = vpop.permute.xlu0 %74  ;;  %v88_v36 = vmul.f32 %v86_v31, %v461_v27 }
  0x84   :  { %v77_v37 = vmul.f32 %v75_v32, %v463_v28 }
  0x85   :  { %v89_v44 = vadd.f32 %v88_v36, %v83_v29  ;;  %v54_v29 = vmul.f32 %v457_v25, %v51_v10  ;;  %v200_v10 = vunpack.c.h.bf16 %v162_v7 }
  0x86   :  { %v78_v45 = vadd.f32 %v77_v37, %v72_v30 }
  0x87   :  { %v102_v22 = vpop.permute.xlu2 %101 }
  0x88   :  { %v90_v51 = vadd.f32 %v89_v44, %v78_v45  ;;  %v104_v37 = vmul.f32 %v102_v22, %v459_v26  ;;  %v168_v45 = vld [vmem:[#allocation3 + $0x58] sm:$0xff]  ;;  %v192_v22 = vunpack.c.h.bf16 %v158_v17 }
  0x89   :  { %v211_v46 = vunpack.c.l.bf16 %v168_v45  ;;  %v212_v47 = vunpack.c.h.bf16 %v168_v45 }
  0x8a   :  { %92 = vrot.lane.b32.xlu1 %v90_v51, %s413_s0  ;;  %v167_v51 = vld [vmem:[#allocation3 + $0x50] sm:$0xff] }
  0x8b   :  { %v140_v57 = vpop.permute.xlu1 %139  ;;  %263 = vmatpush.msra.mxu0 %v211_v46  ;;  %303 = vmatpush.msra.mxu2 %v212_v47 }
  0x8c   :  { %v142_v62 = vmul.f32 %v140_v57, %v457_v25  ;;  %v38_v21 = vpop.permute.xlu0 %37  ;;  %v165_v57 = vld [vmem:[#allocation3 + $0x40] sm:$0xff] }
  0x8d   :  { %v41_v24 = vmul.f32 %v459_v26, %v38_v21  ;;  %v209_v26 = vunpack.c.l.bf16 %v167_v51  ;;  %v206_v63 = vunpack.c.h.bf16 %v165_v57  ;;  %v191_v21 = vunpack.c.l.bf16 %v158_v17 }
  0x8e   :  { %v148_v9 = vadd.f32 %v147_v56, %v142_v62  ;;  %v205_v62 = vunpack.c.l.bf16 %v165_v57 }
  0x8f   :  { %264 = vmatpush.msra.mxu0 %v209_v26 }
  0x90   :  { %v149_v16 = vadd.f32 %v148_v9, %v137_v61  ;;  %v118_v36 = vpop.permute.xlu2 %117  ;;  %v224_v61 = vunpack.c.h.bf16 %v174_v53  ;;  %v199_v9 = vunpack.c.l.bf16 %v162_v7 }
  0x91   :  { %v120_v39 = vmul.f32 %v118_v36, %v461_v27 }
  0x92   :  { %151 = vrot.lane.b32.xlu2 %v149_v16, %s413_s0  ;;  %333 = vmatpush.msra.mxu3 %v224_v61  ;;  %v159_v16 = vld [vmem:[#allocation3 + $0x10] sm:$0xff] }
  0x93   :  { %v193_v19 = vunpack.c.l.bf16 %v159_v16 }
  0x94   :  { %v44_v20 = vpop.permute.xlu1 %43  ;;  %334 = vmatpush.msra.mxu3 %v222_v1 }
  0x95   :  { %v47_v23 = vmul.f32 %v463_v28, %v44_v20  ;;  %v107_v34 = vpop.permute.xlu0 %106  ;;  %v194_v20 = vunpack.c.h.bf16 %v159_v16 }
  0x96   :  { %v109_v38 = vmul.f32 %v107_v34, %v463_v28  ;;  %v210_v28 = vunpack.c.h.bf16 %v167_v51 }
  0x97   :  { %v48_v32 = vadd.f32 %v47_v23, %v41_v24  ;;  %v189_v23 = vunpack.c.l.bf16 %v157_v18  ;;  %v190_v24 = vunpack.c.h.bf16 %v157_v18 }
  0x98   :  { %v110_v42 = vadd.f32 %v109_v38, %v104_v37  ;;  %304 = vmatpush.msra.mxu2 %v210_v28 }
  0x9d   :  { %v57_v30 = vpop.permute.xlu1 %56 }
  0x9e   :  { %v60_v31 = vmul.f32 %v461_v27, %v57_v30  ;;  %v166_v27 = vld [vmem:[#allocation3 + $0x48] sm:$0xff] }
  0x9f   :  { %v207_v55 = vunpack.c.l.bf16 %v166_v27  ;;  %v208_v56 = vunpack.c.h.bf16 %v166_v27 }
  0xa0   :  { %v61_v33 = vadd.f32 %v60_v31, %v54_v29  ;;  %v253_v29 = vld [vmem:[%s494_s2] sm:$0x1f] }
  0xa1   :  { %265 = vmatpush.msra.mxu0 %v207_v55  ;;  %305 = vmatpush.msra.mxu2 %v208_v56 }
  0xa2   :  { %v62_v35 = vadd.f32 %v61_v33, %v48_v32  ;;  %256 = vperm.xlu0 %379, %v253_v29  }
  0xa3   :  { %266 = vmatpush.msra.mxu0 %v205_v62  ;;  %306 = vmatpush.msra.mxu2 %v206_v63 }
  0xa4   :  { %64 = vst.msk [vmem:[#allocation2] sm:$0x1f] %vm63_vm0, %v62_v35 }
  0xa5   :  { %267 = vmatpush.msra.mxu0 %v203_v2  ;;  %307 = vmatpush.msra.mxu2 %v204_v3 }
  0xa6   :  { %v113_v40 = vpop.permute.xlu1 %112 }
  0xa7   :  { %v115_v41 = vmul.f32 %v113_v40, %v457_v25  ;;  %v225_v25 = vunpack.c.l.bf16 %v175_v52  ;;  %268 = vmatpush.msra.mxu0 %v201_v5  ;;  %308 = vmatpush.msra.mxu2 %v202_v6 }
  0xa9   :  { %v121_v43 = vadd.f32 %v120_v39, %v115_v41  ;;  %292 = vmatpush.msra.mxu1 %v225_v25  ;;  %269 = vmatpush.msra.mxu0 %v199_v9 }
  0xaa   :  { %309 = vmatpush.msra.mxu2 %v200_v10 }
  0xab   :  { %v122_v44 = vadd.f32 %v121_v43, %v110_v42  ;;  %293 = vmatpush.msra.mxu1 %v223_v60  ;;  %270 = vmatpush.msra.mxu0 %v197_v11 }
  0xac   :  { %310 = vmatpush.msra.mxu2 %v198_v12 }
  0xad   :  { %123 = vst.msk [vmem:[#allocation2 + $0x8] sm:$0x1f] %vm63_vm0, %v122_v44  ;;  %294 = vmatpush.msra.mxu1 %v221_v0  ;;  %271 = vmatpush.msra.mxu0 %v195_v14 }
  0xae   :  { %311 = vmatpush.msra.mxu2 %v196_v15 }
  0xaf   :  { %272 = vmatpush.msra.mxu0 %v193_v19 }
  0xb0   :  { %312 = vmatpush.msra.mxu2 %v194_v20 }
  0xb1   :  { %273 = vmatpush.msra.mxu0 %v191_v21 }
  0xb2   :  { %313 = vmatpush.msra.mxu2 %v192_v22 }
  0xb3   :  { %274 = vmatpush.msra.mxu0 %v189_v23 }
  0xb4   :  { %314 = vmatpush.msra.mxu2 %v190_v24 }
  0xec   :  { %v152_v30 = vpop.permute.xlu2 %151 }
  0xed   :  { %154 = vst.msk [vmem:[#allocation2 + $0x8] sm:$0x1f] %vm95_vm1, %v152_v30 }
  0xf4   :  { %v156_v31 = vld [vmem:[#allocation2 + $0x8] sm:$0x1f] }
  0xf5   :  { %295 = vmatmul.f32.vlgmr.msra.gmra.mxu1 %v156_v31  ;;  %335 = vmatmul.f32.vlgmr.msra.gmra.mxu3 %v156_v31 }
  0xfc   :  { %v93_v32 = vpop.permute.xlu1 %92 }
  0xfd   :  { %96 = vst.msk [vmem:[#allocation2] sm:$0x1f] %vm95_vm1, %v93_v32 }
 0x104   :  { %v155_v33 = vld [vmem:[#allocation2] sm:$0x1f] }
 0x105   :  { %275 = vmatmul.f32.vlgmr.msra.gmra.mxu0 %v155_v33  ;;  %315 = vmatmul.f32.vlgmr.msra.gmra.mxu2 %v155_v33 }
 0x114   :  { %v257_v34 = vpop.permute.xlu0 %256 }
 0x172   :  { %v296_v37 = vpop.f32.mrf.mxu1 }
 0x178   :  { %v336_v43 = vpop.f32.mrf.mxu3 }
 0x182   :  { %v276_v35 = vpop.f32.mrf.mxu0 }
 0x183   :  { %v277_v36 = vadd.f32 %v276_v35, %v257_v34 }
 0x185   :  { %v297_v38 = vadd.f32 %v296_v37, %v277_v36 }
 0x187   :  { %vm339_vm2 = vcmp.gt.f32.partialorder %v297_v38, 0.0  ;;  %v341_v39 = vmul.f32 0.02, %v297_v38 }
 0x188   :  { %v316_v40 = vpop.f32.mrf.mxu2 }
 0x189   :  { %v343_v41 = vsel %vm339_vm2, %v297_v38, %v341_v39  ;;  %v317_v42 = vadd.f32 %v316_v40, %v257_v34 }
 0x18a   :  { %345 = vst [vmem:[%s496_s4] sm:$0x1f] %v343_v41 }
 0x18b   :  { %v337_v44 = vadd.f32 %v336_v43, %v317_v42 }
 0x18d   :  { %vm340_vm3 = vcmp.gt.f32.partialorder %v337_v44, 0.0  ;;  %v342_v45 = vmul.f32 0.02, %v337_v44 }
 0x18f   :  { %v344_v46 = vsel %vm340_vm3, %v337_v44, %v342_v45 }
 0x190   :  { %346 = vst [vmem:[%s496_s4 + $0x8] sm:$0x1f] %v344_v46 }
 0x191   :  { %351 = vsyncpa [#allocation4], 1 }

</bundles_post_ra>
